<compile_context>
chip_gen: v5e
topology: v5e:2x2
jax: 0.10.0
libtpu: 0.0.40
codegen_flags: <defaults>
</compile_context>

<pallas_src>
import functools

import jax
import jax.numpy as jnp
from jax.experimental import pallas as pl
from jax.experimental.pallas import tpu as pltpu


def _policy_kernel(x_ref, w1_ref, slab_ref, out_ref):
    """Fused 4-matmul chain, everything VMEM resident.

    x_ref:    (TILE_B, 64)  bf16; lanes [0, input_dim) = flat obs, lane 63 = 1.0
    w1_ref:   (64, 128)     bf16; augmented layer-1 block (input_dim -> 2H, bias row 63)
    slab_ref: (3, 128, 128) bf16; augmented blocks
              [0] 2H -> H, [1] H -> 2H (actor|critic hidden), [2] 2H -> (n_actions|value)
    out_ref:  (TILE_B, 128) bf16; lanes [0, n_actions) = logits, lane n_actions = value.
    """
    dt = slab_ref.dtype

    # feature extractor: input_dim -> 2H -> H (ReLU in f32; narrow only for the MXU)
    h = jnp.dot(x_ref[...], w1_ref[...], preferred_element_type=jnp.float32)
    h = jnp.maximum(h, 0.0)
    h = jnp.dot(h.astype(dt), slab_ref[0], preferred_element_type=jnp.float32)
    h = jnp.maximum(h, 0.0)

    # fused actor/critic hidden layer: H -> 2H (lanes [0,H)=actor, [H,2H)=critic)
    h = jnp.dot(h.astype(dt), slab_ref[1], preferred_element_type=jnp.float32)
    h = jnp.maximum(h, 0.0)

    # fused output layer: logits in lanes [0,n_actions), value in lane n_actions
    o = jnp.dot(h.astype(dt), slab_ref[2], preferred_element_type=jnp.float32)
    out_ref[...] = o.astype(out_ref.dtype)


def pack_params(params, input_dim, hidden_dim, n_actions, dtype=jnp.bfloat16):
    """Pack weights+biases into an augmented (64,128) layer-1 block + (3,128,128) slab."""
    H = hidden_dim
    # The ones-lane/bias trick needs every logical width to fit below the ones lane.
    assert input_dim <= 63 and 2 * H <= 126 and n_actions + 1 <= 126, (
        "pack_params: input_dim must be <= 63 and 2*hidden_dim, n_actions+1 must be <= 126 "
        "to fit the augmented bias lane.")

    # layer 1: rows [0, input_dim) = w1, bias at row 63, [63,127]=1 propagates the ones lane.
    blk1 = jnp.zeros((64, 128), jnp.float32)
    blk1 = blk1.at[:input_dim, :2 * H].set(params["w1"].astype(jnp.float32))
    blk1 = blk1.at[63, :2 * H].set(params["b1"].astype(jnp.float32))
    blk1 = blk1.at[63, 127].set(1.0)

    def aug(w, b):
        fi, fo = w.shape
        blk = jnp.zeros((128, 128), jnp.float32)
        blk = blk.at[:fi, :fo].set(w.astype(jnp.float32))
        blk = blk.at[127, :fo].set(b.astype(jnp.float32))
        blk = blk.at[127, 127].set(1.0)          # propagate the ones lane
        return blk

    blk2 = aug(params["w2"], params["b2"])                               # 2H -> H
    blk3 = aug(jnp.concatenate([params["wa1"], params["wc1"]], axis=1),  # H -> 2H fused
               jnp.concatenate([params["ba1"], params["bc1"]], axis=0))

    blk4 = jnp.zeros((128, 128), jnp.float32)                            # 2H -> (A | 1)
    blk4 = blk4.at[:H, :n_actions].set(params["wa2"].astype(jnp.float32))
    blk4 = blk4.at[H:2 * H, n_actions:n_actions + 1].set(params["wc2"].astype(jnp.float32))
    blk4 = blk4.at[127, :n_actions].set(params["ba2"].astype(jnp.float32))
    blk4 = blk4.at[127, n_actions].set(params["bc2"][0].astype(jnp.float32))
    blk4 = blk4.at[127, 127].set(1.0)

    slab = jnp.stack([blk2, blk3, blk4]).astype(dtype)
    return blk1.astype(dtype), slab


def _round_up(x, m):
    return -(-x // m) * m


@functools.partial(jax.jit, static_argnames=("n_actions",))
def hybrid_ppo_policy_forward(real_obs, action_mask, w1_blk, slab, *, n_actions):
    """Replicates HybridPPOPolicy.forward (use_gnn=False path).

    real_obs:    (B, jobs, features_per_job)
    action_mask: (B, n_actions)
    w1_blk,slab: packed params from pack_params()
    Returns (action_logits (B, n_actions) f32, action_mask, state_value (B, 1) f32).
    """
    B = real_obs.shape[0]
    dtype = slab.dtype
    flat = real_obs.reshape(B, -1).astype(dtype)     # build the padded slab directly in bf16
    input_dim = flat.shape[1]

    # Batch tiling: multiples of 16 sublanes (native bf16 packing), cap 512 rows/step,
    # and >= 2 grid steps for mid-size batches so both v7x TensorCores get work.
    b16 = _round_up(B, 16)
    tile_b = 16 if b16 <= 16 else min(512, _round_up(-(-b16 // 2), 16))
    b_pad = _round_up(B, tile_b)

    # 64-lane, ones-augmented activation slab (obs | zeros | 1.0 at lane 63), bf16 end-to-end.
    x = jnp.concatenate(
        [flat,
         jnp.zeros((B, 63 - input_dim), dtype),
         jnp.ones((B, 1), dtype)], axis=1)
    x = jnp.concatenate([x, jnp.zeros((b_pad - B, 64), dtype)], axis=0)

    out = pl.pallas_call(
        _policy_kernel,
        out_shape=jax.ShapeDtypeStruct((b_pad, 128), dtype),
        grid=(b_pad // tile_b,),
        in_specs=[
            pl.BlockSpec((tile_b, 64), lambda i: (i, 0)),       # activations: tile batch
            pl.BlockSpec((64, 128), lambda i: (0, 0)),          # layer-1 weights: resident
            pl.BlockSpec((3, 128, 128), lambda i: (0, 0, 0)),   # remaining weights: resident
        ],
        out_specs=pl.BlockSpec((tile_b, 128), lambda i: (i, 0)),
        compiler_params=pltpu.CompilerParams(dimension_semantics=("parallel",)),
    )(x, w1_blk, slab)

    logits = out[:B, :n_actions].astype(jnp.float32)
    value = out[:B, n_actions:n_actions + 1].astype(jnp.float32)
    return logits, action_mask, value


def init_params(key, input_dim, hidden_dim, n_actions):
    """Deterministic parameter init matching the nn.Module layer shapes (stored (in, out))."""
    ks = jax.random.split(key, 6)

    def lin(k, fan_in, fan_out):
        kw, kb = jax.random.split(k)
        bound = 1.0 / (fan_in ** 0.5)
        w = jax.random.uniform(kw, (fan_in, fan_out), jnp.float32, -bound, bound)
        b = jax.random.uniform(kb, (fan_out,), jnp.float32, -bound, bound)
        return w, b

    H = hidden_dim
    w1, b1 = lin(ks[0], input_dim, 2 * H)
    w2, b2 = lin(ks[1], 2 * H, H)
    wa1, ba1 = lin(ks[2], H, H)
    wa2, ba2 = lin(ks[3], H, n_actions)
    wc1, bc1 = lin(ks[4], H, H)
    wc2, bc2 = lin(ks[5], H, 1)
    return {"w1": w1, "b1": b1, "w2": w2, "b2": b2,
            "wa1": wa1, "ba1": ba1, "wa2": wa2, "ba2": ba2,
            "wc1": wc1, "bc1": bc1, "wc2": wc2, "bc2": bc2}


def _reference(real_obs, params, compute_dtype):
    """Plain-JAX reference mirroring bf16-operand / f32-accumulate / bf16-output math."""
    def q(a):
        return a.astype(compute_dtype).astype(jnp.float32)

    def dense(h, w, b):
        return q(h) @ q(w) + q(b)

    B = real_obs.shape[0]
    x = real_obs.reshape(B, -1)
    h1 = jnp.maximum(dense(x, params["w1"], params["b1"]), 0.0)
    feat = jnp.maximum(dense(h1, params["w2"], params["b2"]), 0.0)
    a1 = jnp.maximum(dense(feat, params["wa1"], params["ba1"]), 0.0)
    logits = dense(a1, params["wa2"], params["ba2"])
    c1 = jnp.maximum(dense(feat, params["wc1"], params["bc1"]), 0.0)
    value = dense(c1, params["wc2"], params["bc2"])
    # kernel rounds its final f32 accumulator to bf16 once at store time
    return q(logits), q(value)


if __name__ == "__main__":
    # Small JSS-like observation space: 8 jobs, 4 features per job, 9 actions (jobs + no-op).
    jobs, feat_per_job, hidden_dim, n_actions = 8, 4, 32, 9
    input_dim = jobs * feat_per_job
    compute_dtype = jnp.bfloat16   # bf16 operands + output, f32 accumulation

    key = jax.random.PRNGKey(0)
    k_obs, k_mask, k_par, k_obs2, k_mask2 = jax.random.split(key, 5)

    params = init_params(k_par, input_dim, hidden_dim, n_actions)
    w1_blk, slab = pack_params(params, input_dim, hidden_dim, n_actions, dtype=compute_dtype)

    ok = True
    # Case 1: tiny rollout batch (B=2, single 16-row grid step).
    # Case 2: mid-size batch (B=100 -> two 64-row grid steps, exercises padding + megacore path).
    for (B, ko, km) in ((2, k_obs, k_mask), (100, k_obs2, k_mask2)):
        real_obs = jax.random.uniform(ko, (B, jobs, feat_per_job), jnp.float32)
        action_mask = (jax.random.uniform(km, (B, n_actions)) > 0.3).astype(jnp.float32)

        logits, mask_out, value = hybrid_ppo_policy_forward(
            real_obs, action_mask, w1_blk, slab, n_actions=n_actions)
        jax.block_until_ready((logits, mask_out, value))

        ref_logits, ref_value = _reference(real_obs, params, compute_dtype)

        assert logits.shape == (B, n_actions) and value.shape == (B, 1)
        assert jnp.array_equal(mask_out, action_mask), "action_mask must pass through unchanged"
        ok &= bool(jnp.allclose(logits, ref_logits, atol=1e-2, rtol=1e-2))
        ok &= bool(jnp.allclose(value, ref_value, atol=1e-2, rtol=1e-2))

    assert ok, "kernel output mismatch vs reference"
    print("KERNEL_OK")
</pallas_src>

<mosaic_0001>
module attributes {stable_mosaic.version = 11 : i64} {
  func.func @_policy_kernel(%arg0: i32, %arg1: memref<16x64xbf16, #tpu.memory_space<vmem>>, %arg2: memref<64x128xbf16, #tpu.memory_space<vmem>>, %arg3: memref<3x128x128xbf16, #tpu.memory_space<vmem>>, %arg4: memref<16x128xbf16, #tpu.memory_space<vmem>>) attributes {dimension_semantics = [#tpu.dimension_semantics<parallel>], iteration_bounds = array<i64: 1>, scalar_prefetch = 0 : i64, scratch_operands = 0 : i64, tpu.core_type = #tpu.core_type<tc>, window_params = [{transform_indices = @transform_0, window_bounds = array<i64: 16, 64>}, {pipeline_mode = #tpu.pipeline_mode<synchronous>, transform_indices = @transform_1, window_bounds = array<i64: 64, 128>}, {pipeline_mode = #tpu.pipeline_mode<synchronous>, transform_indices = @transform_2, window_bounds = array<i64: 3, 128, 128>}, {transform_indices = @transform_3, window_bounds = array<i64: 16, 128>}]} {
    %c0 = arith.constant 0 : index
    %c0_0 = arith.constant 0 : index
    %0 = vector.load %arg1[%c0, %c0_0] : memref<16x64xbf16, #tpu.memory_space<vmem>>, vector<16x64xbf16>
    %c0_1 = arith.constant 0 : index
    %c0_2 = arith.constant 0 : index
    %1 = vector.load %arg2[%c0_1, %c0_2] : memref<64x128xbf16, #tpu.memory_space<vmem>>, vector<64x128xbf16>
    %cst = arith.constant dense<0.000000e+00> : vector<16x128xf32>
    %2 = tpu.matmul %0, %1, %cst {dimension_numbers = #tpu.dot_dimension_numbers<[1], [0], [0], [1], [0, 0, 1, 1], [], []>} : vector<16x64xbf16>, vector<64x128xbf16>, vector<16x128xf32> -> vector<16x128xf32>
    %cst_3 = arith.constant 0.000000e+00 : f32
    %3 = vector.broadcast %cst_3 : f32 to vector<16x128xf32>
    %4 = arith.maximumf %2, %3 : vector<16x128xf32>
    %5 = arith.truncf %4 : vector<16x128xf32> to vector<16x128xbf16>
    %c0_4 = arith.constant 0 : index
    %c0_5 = arith.constant 0 : index
    %c0_6 = arith.constant 0 : index
    %6 = vector.load %arg3[%c0_4, %c0_5, %c0_6] : memref<3x128x128xbf16, #tpu.memory_space<vmem>>, vector<1x128x128xbf16>
    %7 = vector.shape_cast %6 : vector<1x128x128xbf16> to vector<128x128xbf16>
    %cst_7 = arith.constant dense<0.000000e+00> : vector<16x128xf32>
    %8 = tpu.matmul %5, %7, %cst_7 {dimension_numbers = #tpu.dot_dimension_numbers<[1], [0], [0], [1], [0, 0, 1, 1], [], []>} : vector<16x128xbf16>, vector<128x128xbf16>, vector<16x128xf32> -> vector<16x128xf32>
    %cst_8 = arith.constant 0.000000e+00 : f32
    %9 = vector.broadcast %cst_8 : f32 to vector<16x128xf32>
    %10 = arith.maximumf %8, %9 : vector<16x128xf32>
    %11 = arith.truncf %10 : vector<16x128xf32> to vector<16x128xbf16>
    %c1 = arith.constant 1 : index
    %c0_9 = arith.constant 0 : index
    %c0_10 = arith.constant 0 : index
    %12 = vector.load %arg3[%c1, %c0_9, %c0_10] : memref<3x128x128xbf16, #tpu.memory_space<vmem>>, vector<1x128x128xbf16>
    %13 = vector.shape_cast %12 : vector<1x128x128xbf16> to vector<128x128xbf16>
    %cst_11 = arith.constant dense<0.000000e+00> : vector<16x128xf32>
    %14 = tpu.matmul %11, %13, %cst_11 {dimension_numbers = #tpu.dot_dimension_numbers<[1], [0], [0], [1], [0, 0, 1, 1], [], []>} : vector<16x128xbf16>, vector<128x128xbf16>, vector<16x128xf32> -> vector<16x128xf32>
    %cst_12 = arith.constant 0.000000e+00 : f32
    %15 = vector.broadcast %cst_12 : f32 to vector<16x128xf32>
    %16 = arith.maximumf %14, %15 : vector<16x128xf32>
    %17 = arith.truncf %16 : vector<16x128xf32> to vector<16x128xbf16>
    %c2 = arith.constant 2 : index
    %c0_13 = arith.constant 0 : index
    %c0_14 = arith.constant 0 : index
    %18 = vector.load %arg3[%c2, %c0_13, %c0_14] : memref<3x128x128xbf16, #tpu.memory_space<vmem>>, vector<1x128x128xbf16>
    %19 = vector.shape_cast %18 : vector<1x128x128xbf16> to vector<128x128xbf16>
    %cst_15 = arith.constant dense<0.000000e+00> : vector<16x128xf32>
    %20 = tpu.matmul %17, %19, %cst_15 {dimension_numbers = #tpu.dot_dimension_numbers<[1], [0], [0], [1], [0, 0, 1, 1], [], []>} : vector<16x128xbf16>, vector<128x128xbf16>, vector<16x128xf32> -> vector<16x128xf32>
    %21 = arith.truncf %20 : vector<16x128xf32> to vector<16x128xbf16>
    %c0_16 = arith.constant 0 : index
    %c0_17 = arith.constant 0 : index
    %22 = vector.load %arg4[%c0_16, %c0_17] : memref<16x128xbf16, #tpu.memory_space<vmem>>, vector<16x128xbf16>
    tpu.vector_store %arg4[%c0_16, %c0_17], %21 {strides = array<i32>} : memref<16x128xbf16, #tpu.memory_space<vmem>>, vector<16x128xbf16>,
    return
  }
  func.func @transform_0(%arg0: i32) -> (i32, i32) {
    %c0_i32 = arith.constant 0 : i32
    %c0_i32_0 = arith.constant 0 : i32
    return %arg0, %c0_i32 : i32, i32
  }
  func.func @transform_1(%arg0: i32) -> (i32, i32) {
    %c0_i32 = arith.constant 0 : i32
    %c0_i32_0 = arith.constant 0 : i32
    %c0_i32_1 = arith.constant 0 : i32
    return %c0_i32, %c0_i32_0 : i32, i32
  }
  func.func @transform_2(%arg0: i32) -> (i32, i32, i32) {
    %c0_i32 = arith.constant 0 : i32
    %c0_i32_0 = arith.constant 0 : i32
    %c0_i32_1 = arith.constant 0 : i32
    %c0_i32_2 = arith.constant 0 : i32
    return %c0_i32, %c0_i32_0, %c0_i32_1 : i32, i32, i32
  }
  func.func @transform_3(%arg0: i32) -> (i32, i32) {
    %c0_i32 = arith.constant 0 : i32
    %c0_i32_0 = arith.constant 0 : i32
    return %arg0, %c0_i32 : i32, i32
  }
}

</mosaic_0001>

<bundles_post_ra>
// kernel: hybrid_ppo_policy_forward.1
= control target key start
LH: loop header
LB: loop body
LE: loop exit
PB: predicated region body
PF: predicated region fallthrough
CT: control target
= control target key end

     0   :  { %8 = vsyncpa [#allocation3], 0  ;;  %s522_s15 = smov [#allocation2]   ;;  %s523_s17 = smov 64   ;;  %s566_s0 = inlined_call_operand.vmem [shape: bf16[16,64], index: 0, kind: input, shape index: {}]   ;;  %s567_s1 = inlined_call_operand.vmem [shape: bf16[64,128], index: 1, kind: input, shape index: {}]   ;;  %s568_s2 = inlined_call_operand.hbm [shape: bf16[3,128,128], index: 2, kind: input, shape index: {}]   ;;  %s569_s3 = inlined_call_operand.vmem [shape: bf16[16,128], index: 3, kind: output, shape index: {}]  }
   0x1   :  { %s17_s14 = sshll.u32 %s568_s2, 4  ;;  %s19_s16 = sshll.u32 %s522_s15, 4  ;;  %s18_s14 = int_to_ptr.hbm [resolvable:$true] %s17_s14  ;;  %s20_s16 = int_to_ptr.vmem [resolvable:$true] %s19_s16 }
   0x2   :  { %s524_s18 = smov 4  }
   0x3   :  { %25 = dma.hbm_to_vmem [thread:$0]  %s18_s14, 3072, %s20_s16, [#allocation3], %s523_s17, %s523_s17, %s524_s18  }
   0x4   :  { %520 = dma.done.wait [#allocation3], 3072  }
   0x5   :  { %521 = vsyncadd [#allocation3], 4294964224  ;;  %v463_v0 = vld [vmem:[%s567_s1 + $0x18] sm:$0xff]  ;;  %v462_v2 = vld [vmem:[%s567_s1 + $0x10] sm:$0xff]  ;;  %vm70_vm0 = vcmask 523264  }
   0x6   :  { %v471_v1 = vld [vmem:[#allocation2 + $0x38] sm:$0xff]  ;;  %78 = vmatpush.bf16.msra.mxu0 %v463_v0  ;;  %v470_v3 = vld [vmem:[#allocation2 + $0x30] sm:$0xff]  ;;  %v461_v4 = vld [vmem:[%s567_s1 + $0x8] sm:$0xff] }
   0x7   :  { %155 = vmatpush.bf16.msra.mxu1 %v471_v1  ;;  %v469_v5 = vld [vmem:[#allocation2 + $0x28] sm:$0xff]  ;;  %v460_v6 = vld [vmem:[%s567_s1] sm:$0xff]  ;;  %v467_v9 = vld [vmem:[#allocation2 + $0x18] sm:$0xff] }
   0x8   :  { %v468_v7 = vld [vmem:[#allocation2 + $0x20] sm:$0xff]  ;;  %v466_v10 = vld [vmem:[#allocation2 + $0x10] sm:$0xff]  ;;  %v465_v11 = vld [vmem:[#allocation2 + $0x8] sm:$0xff] }
   0x9   :  { %v459_v8 = vld [vmem:[%s566_s0] sm:$0xff]  ;;  %v479_v13 = vld [vmem:[#allocation2 + $0x78] sm:$0xff]  ;;  %v478_v14 = vld [vmem:[#allocation2 + $0x70] sm:$0xff] }
   0xa   :  { %79 = vmatpush.bf16.msra.mxu0 %v462_v2  ;;  %v464_v12 = vld [vmem:[#allocation2] sm:$0xff]  ;;  %237 = vmatpush.bf16.msra.mxu2 %v479_v13  ;;  %v477_v15 = vld [vmem:[#allocation2 + $0x68] sm:$0xff]  ;;  %v475_v17 = vld [vmem:[#allocation2 + $0x58] sm:$0xff] }
   0xb   :  { %156 = vmatpush.bf16.msra.mxu1 %v470_v3  ;;  %v476_v16 = vld [vmem:[#allocation2 + $0x60] sm:$0xff]  ;;  %v474_v23 = vld [vmem:[#allocation2 + $0x50] sm:$0xff]  ;;  %v473_v24 = vld [vmem:[#allocation2 + $0x48] sm:$0xff] }
   0xc   :  { %v472_v25 = vld [vmem:[#allocation2 + $0x40] sm:$0xff]  ;;  %v487_v26 = vld [vmem:[#allocation2 + $0xb8] sm:$0xff]  ;;  %v486_v27 = vld [vmem:[#allocation2 + $0xb0] sm:$0xff] }
   0xd   :  { %319 = vmatpush.bf16.msra.mxu3 %v487_v26  ;;  %v485_v28 = vld [vmem:[#allocation2 + $0xa8] sm:$0xff]  ;;  %v484_v29 = vld [vmem:[#allocation2 + $0xa0] sm:$0xff]  ;;  %v483_v30 = vld [vmem:[#allocation2 + $0x98] sm:$0xff] }
   0xe   :  { %80 = vmatpush.bf16.msra.mxu0 %v461_v4  ;;  %238 = vmatpush.bf16.msra.mxu2 %v478_v14  ;;  %v482_v36 = vld [vmem:[#allocation2 + $0x90] sm:$0xff]  ;;  %v481_v37 = vld [vmem:[#allocation2 + $0x88] sm:$0xff]  ;;  %v480_v38 = vld [vmem:[#allocation2 + $0x80] sm:$0xff] }
   0xf   :  { %157 = vmatpush.bf16.msra.mxu1 %v469_v5 }
  0x11   :  { %320 = vmatpush.bf16.msra.mxu3 %v486_v27 }
  0x12   :  { %81 = vmatpush.bf16.msra.mxu0 %v460_v6  ;;  %239 = vmatpush.bf16.msra.mxu2 %v477_v15 }
  0x13   :  { %158 = vmatpush.bf16.msra.mxu1 %v468_v7 }
  0x15   :  { %362 = vmatmul.msk.bf16.vlgmr.msra.gmra.mxu0 %vm70_vm0, %v459_v8  ;;  %321 = vmatpush.bf16.msra.mxu3 %v485_v28 }
  0x16   :  { %240 = vmatpush.bf16.msra.mxu2 %v476_v16 }
  0x17   :  { %159 = vmatpush.bf16.msra.mxu1 %v467_v9 }
  0x19   :  { %322 = vmatpush.bf16.msra.mxu3 %v484_v29 }
  0x1a   :  { %241 = vmatpush.bf16.msra.mxu2 %v475_v17 }
  0x1b   :  { %160 = vmatpush.bf16.msra.mxu1 %v466_v10 }
  0x1d   :  { %323 = vmatpush.bf16.msra.mxu3 %v483_v30 }
  0x1e   :  { %242 = vmatpush.bf16.msra.mxu2 %v474_v23 }
  0x1f   :  { %161 = vmatpush.bf16.msra.mxu1 %v465_v11 }
  0x21   :  { %324 = vmatpush.bf16.msra.mxu3 %v482_v36 }
  0x22   :  { %243 = vmatpush.bf16.msra.mxu2 %v473_v24 }
  0x23   :  { %162 = vmatpush.bf16.msra.mxu1 %v464_v12 }
  0x25   :  { %325 = vmatpush.bf16.msra.mxu3 %v481_v37 }
  0x26   :  { %244 = vmatpush.bf16.msra.mxu2 %v472_v25 }
  0x29   :  { %326 = vmatpush.bf16.msra.mxu3 %v480_v38 }
  0x92   :  { %v83_v18 = vpop.f32.mrf.mxu0 }
  0x93   :  { %v88_v20 = vmax.f32 %v83_v18, 0.0 }
  0x9a   :  { %v85_v19 = vpop.f32.mrf.mxu0 }
  0x9b   :  { %v89_v21 = vmax.f32 %v85_v19, 0.0 }
  0x9d   :  { %v90_v22 = vpack.c.bf16 %v89_v21, %v88_v20 }
  0x9f   :  { %163 = vmatmul.bf16.vlgmr.msra.gmra.mxu1 %v90_v22 }
 0x11c   :  { %v164_v31 = vpop.f32.mrf.mxu1 }
 0x11d   :  { %v169_v33 = vmax.f32 %v164_v31, 0.0 }
 0x124   :  { %v166_v32 = vpop.f32.mrf.mxu1 }
 0x125   :  { %v170_v34 = vmax.f32 %v166_v32, 0.0 }
 0x127   :  { %v171_v35 = vpack.c.bf16 %v170_v34, %v169_v33 }
 0x129   :  { %245 = vmatmul.bf16.vlgmr.msra.gmra.mxu2 %v171_v35 }
 0x1ac   :  { %v246_v39 = vpop.f32.mrf.mxu2 }
 0x1ad   :  { %v251_v41 = vmax.f32 %v246_v39, 0.0 }
 0x1b4   :  { %v248_v40 = vpop.f32.mrf.mxu2 }
 0x1b5   :  { %v252_v42 = vmax.f32 %v248_v40, 0.0 }
 0x1b7   :  { %v253_v43 = vpack.c.bf16 %v252_v42, %v251_v41 }
 0x1b9   :  { %327 = vmatmul.bf16.vlgmr.msra.gmra.mxu3 %v253_v43 }
 0x23c   :  { %v328_v44 = vpop.f32.mrf.mxu3 }
 0x244   :  { %v330_v45 = vpop.f32.mrf.mxu3 }
 0x245   :  { %v491_v46 = vpack.c.bf16 %v330_v45, %v328_v44 }
 0x247   :  { %492 = vst [vmem:[%s569_s3] sm:$0xff] %v491_v46  }
 0x248   :  { %341 = vsyncpa [#allocation3], 1 }

</bundles_post_ra>
